<compile_context>
chip_gen: v7x
topology: tpu7x:2x2x1
jax: 0.10.0
libtpu: 0.0.40
codegen_flags: <defaults>
</compile_context>

<pallas_src>
import functools

import jax
import jax.numpy as jnp
from jax.experimental import pallas as pl
from jax.experimental.pallas import tpu as pltpu


def _round_up(n, m):
    return ((n + m - 1) // m) * m


def _mdn_kernel(x_ref, w_ref, b_ref, out_ref, *, num_components, kd):
    """One fused GEMM + per-lane-range activation (softmax / identity / exp)."""
    K = num_components
    # [TB, L] bf16 @ [L, P] bf16 -> f32 accumulate; bias add in f32.
    y = jnp.dot(x_ref[...], w_ref[...],
                preferred_element_type=jnp.float32) + b_ref[...]

    tb, p = y.shape
    col = jax.lax.broadcasted_iota(jnp.int32, (tb, p), 1)
    is_pi = col < K
    is_sigma = jnp.logical_and(col >= K + kd, col < K + 2 * kd)

    # --- softmax over the first K lanes (numerically stabilized, exact) ----
    logits = jnp.where(is_pi, y, -jnp.inf)
    m = jnp.max(logits, axis=1, keepdims=True)
    e = jnp.where(is_pi, jnp.exp(logits - m), 0.0)
    denom = jnp.sum(e, axis=1, keepdims=True)
    pi = e / denom

    # --- sigma = exp(.) on its lane range (zeros elsewhere, exp(0)=1) ------
    sig = jnp.exp(jnp.where(is_sigma, y, 0.0))

    # pi lanes -> softmax, sigma lanes -> exp, mu + padding lanes -> raw y.
    out_ref[...] = jnp.where(is_pi, pi, jnp.where(is_sigma, sig, y))


def mixture_network_forward(x, params, num_components, output_dim):
    """x: [B, L] float32. params: w1,b1,w2,b2,w3,b3 with weights stored [L, out]."""
    B, L = x.shape
    K = num_components
    KD = num_components * output_dim
    P = _round_up(K + 2 * KD, 128)          # lane-dense packed output width

    # --- pack + pad weights/bias once in the wrapper ------------------------
    w_packed = jnp.concatenate([params["w1"], params["w2"], params["w3"]], axis=1)
    b_packed = jnp.concatenate([params["b1"], params["b2"], params["b3"]], axis=1)
    pad = P - (K + 2 * KD)
    w_packed = jnp.pad(w_packed, ((0, 0), (0, pad))).astype(jnp.bfloat16)
    b_packed = jnp.pad(b_packed, ((0, 0), (0, pad))).astype(jnp.float32)
    x_bf16 = x.astype(jnp.bfloat16)

    # --- batch tiling: TB-row tiles (multiple of 8), padded batch ------------
    TB = min(512, _round_up(B, 8))
    Bp = _round_up(B, TB)
    if Bp != B:
        x_bf16 = jnp.pad(x_bf16, ((0, Bp - B), (0, 0)))
    grid = (Bp // TB,)

    cost = pl.CostEstimate(
        flops=2 * Bp * L * P,
        transcendentals=Bp * (K + KD),
        bytes_accessed=(Bp * L * 2 + L * P * 2 + P * 4 + Bp * P * 4),
    )

    out = pl.pallas_call(
        functools.partial(_mdn_kernel, num_components=K, kd=KD),
        out_shape=jax.ShapeDtypeStruct((Bp, P), jnp.float32),
        grid=grid,
        in_specs=[
            pl.BlockSpec((TB, L), lambda i: (i, 0)),   # x tile (pipelined)
            pl.BlockSpec((L, P), lambda i: (0, 0)),    # packed W (VMEM-resident)
            pl.BlockSpec((1, P), lambda i: (0, 0)),    # packed bias (resident)
        ],
        out_specs=pl.BlockSpec((TB, P), lambda i: (i, 0)),
        compiler_params=pltpu.CompilerParams(
            dimension_semantics=("parallel",),         # shard batch across TCs
            vmem_limit_bytes=48 << 20,                 # fits v7x's 64 MiB VMEM
        ),
        cost_estimate=cost,
    )(x_bf16, w_packed, b_packed)

    y = out[:B]
    pi = y[:, :K]
    mu = y[:, K:K + KD].reshape(B, K, output_dim)
    sigma = y[:, K + KD:K + 2 * KD].reshape(B, K, output_dim)
    return pi, mu, sigma


def init_params(key, latent_dim, output_dim, num_components):
    """Deterministic init mimicking torch.nn.Linear's U(-1/sqrt(fan_in), ...)."""
    K, KD = num_components, num_components * output_dim
    bound = 1.0 / jnp.sqrt(jnp.float32(latent_dim))
    ks = jax.random.split(key, 6)
    u = lambda k, shape: jax.random.uniform(
        k, shape, jnp.float32, minval=-bound, maxval=bound)
    return {
        "w1": u(ks[0], (latent_dim, K)),  "b1": u(ks[1], (1, K)),
        "w2": u(ks[2], (latent_dim, KD)), "b2": u(ks[3], (1, KD)),
        "w3": u(ks[4], (latent_dim, KD)), "b3": u(ks[5], (1, KD)),
    }


if __name__ == "__main__":
    latent_dim, output_dim, num_components = 32, 8, 4
    batch = 8

    key = jax.random.PRNGKey(0)
    k_x, k_p = jax.random.split(key)
    x = jax.random.normal(k_x, (batch, latent_dim), dtype=jnp.float32)
    params = init_params(k_p, latent_dim, output_dim, num_components)

    pi, mu, sigma = mixture_network_forward(x, params, num_components, output_dim)
    jax.block_until_ready((pi, mu, sigma))

    # pure-JAX reference using the same bf16-matmul / f32-accumulate recipe
    xb = x.astype(jnp.bfloat16)

    def lin(w, b):
        return jnp.dot(xb, w.astype(jnp.bfloat16),
                       preferred_element_type=jnp.float32) + b

    ref_pi = jax.nn.softmax(lin(params["w1"], params["b1"]), axis=1)
    ref_mu = lin(params["w2"], params["b2"]).reshape(
        -1, num_components, output_dim)
    ref_sigma = jnp.exp(lin(params["w3"], params["b3"])).reshape(
        -1, num_components, output_dim)

    assert pi.shape == (batch, num_components)
    assert mu.shape == (batch, num_components, output_dim)
    assert sigma.shape == (batch, num_components, output_dim)
    assert jnp.allclose(pi, ref_pi, atol=1e-3, rtol=1e-3)
    assert jnp.allclose(mu, ref_mu, atol=1e-3, rtol=1e-3)
    assert jnp.allclose(sigma, ref_sigma, atol=1e-3, rtol=1e-3)

    print("KERNEL_OK")
</pallas_src>

<mosaic_0001>
module attributes {stable_mosaic.version = 11 : i64} {
  func.func @_mdn_kernel(%arg0: i32, %arg1: memref<8x32xbf16, #tpu.memory_space<vmem>>, %arg2: memref<32x128xbf16, #tpu.memory_space<vmem>>, %arg3: memref<1x128xf32, #tpu.memory_space<vmem>>, %arg4: memref<8x128xf32, #tpu.memory_space<vmem>>) attributes {dimension_semantics = [#tpu.dimension_semantics<parallel>], iteration_bounds = array<i64: 1>, scalar_prefetch = 0 : i64, scratch_operands = 0 : i64, tpu.core_type = #tpu.core_type<tc>, window_params = [{transform_indices = @transform_0, window_bounds = array<i64: 8, 32>}, {pipeline_mode = #tpu.pipeline_mode<synchronous>, transform_indices = @transform_1, window_bounds = array<i64: 32, 128>}, {pipeline_mode = #tpu.pipeline_mode<synchronous>, transform_indices = @transform_2, window_bounds = array<i64: 1, 128>}, {transform_indices = @transform_3, window_bounds = array<i64: 8, 128>}]} {
    %c0 = arith.constant 0 : index
    %c0_0 = arith.constant 0 : index
    %0 = vector.load %arg1[%c0, %c0_0] : memref<8x32xbf16, #tpu.memory_space<vmem>>, vector<8x32xbf16>
    %c0_1 = arith.constant 0 : index
    %c0_2 = arith.constant 0 : index
    %1 = vector.load %arg2[%c0_1, %c0_2] : memref<32x128xbf16, #tpu.memory_space<vmem>>, vector<32x128xbf16>
    %cst = arith.constant dense<0.000000e+00> : vector<8x128xf32>
    %2 = tpu.matmul %0, %1, %cst {dimension_numbers = #tpu.dot_dimension_numbers<[1], [0], [0], [1], [0, 0, 1, 1], [], []>} : vector<8x32xbf16>, vector<32x128xbf16>, vector<8x128xf32> -> vector<8x128xf32>
    %c0_3 = arith.constant 0 : index
    %c0_4 = arith.constant 0 : index
    %3 = vector.load %arg3[%c0_3, %c0_4] : memref<1x128xf32, #tpu.memory_space<vmem>>, vector<1x128xf32>
    %4 = vector.broadcast %3 : vector<1x128xf32> to vector<8x128xf32>
    %5 = arith.addf %2, %4 : vector<8x128xf32>
    %6 = tpu.iota {dimensions = array<i32: 1>} : vector<8x128xi32>
    %c4_i32 = arith.constant 4 : i32
    %7 = vector.broadcast %c4_i32 : i32 to vector<8x128xi32>
    %8 = arith.cmpi slt, %6, %7 : vector<8x128xi32>
    %c36_i32 = arith.constant 36 : i32
    %9 = vector.broadcast %c36_i32 : i32 to vector<8x128xi32>
    %10 = arith.cmpi sge, %6, %9 : vector<8x128xi32>
    %c68_i32 = arith.constant 68 : i32
    %11 = vector.broadcast %c68_i32 : i32 to vector<8x128xi32>
    %12 = arith.cmpi slt, %6, %11 : vector<8x128xi32>
    %13 = arith.andi %10, %12 : vector<8x128xi1>
    %cst_5 = arith.constant 0xFF800000 : f32
    %14 = vector.broadcast %cst_5 : f32 to vector<8x128xf32>
    %15 = arith.select %8, %5, %14 : vector<8x128xi1>, vector<8x128xf32>
    %cst_6 = arith.constant dense<0xFF800000> : vector<8xf32>
    %16 = vector.multi_reduction <maximumf>, %15, %cst_6 [1] : vector<8x128xf32> to vector<8xf32>
    %17 = vector.shape_cast %16 : vector<8xf32> to vector<8x1xf32>
    %18 = vector.broadcast %17 : vector<8x1xf32> to vector<8x128xf32>
    %19 = arith.subf %15, %18 : vector<8x128xf32>
    %20 = math.exp %19 : vector<8x128xf32>
    %cst_7 = arith.constant 0.000000e+00 : f32
    %21 = vector.broadcast %cst_7 : f32 to vector<8x128xf32>
    %22 = arith.select %8, %20, %21 : vector<8x128xi1>, vector<8x128xf32>
    %cst_8 = arith.constant dense<0.000000e+00> : vector<8xf32>
    %23 = vector.multi_reduction <add>, %22, %cst_8 [1] : vector<8x128xf32> to vector<8xf32>
    %24 = vector.shape_cast %23 : vector<8xf32> to vector<8x1xf32>
    %25 = vector.broadcast %24 : vector<8x1xf32> to vector<8x128xf32>
    %26 = arith.divf %22, %25 : vector<8x128xf32>
    %cst_9 = arith.constant 0.000000e+00 : f32
    %27 = vector.broadcast %cst_9 : f32 to vector<8x128xf32>
    %28 = arith.select %13, %5, %27 : vector<8x128xi1>, vector<8x128xf32>
    %29 = math.exp %28 : vector<8x128xf32>
    %30 = arith.select %13, %29, %5 : vector<8x128xi1>, vector<8x128xf32>
    %31 = arith.select %8, %26, %30 : vector<8x128xi1>, vector<8x128xf32>
    %c0_10 = arith.constant 0 : index
    %c0_11 = arith.constant 0 : index
    %32 = vector.load %arg4[%c0_10, %c0_11] : memref<8x128xf32, #tpu.memory_space<vmem>>, vector<8x128xf32>
    tpu.vector_store %arg4[%c0_10, %c0_11], %31 {strides = array<i32>} : memref<8x128xf32, #tpu.memory_space<vmem>>, vector<8x128xf32>,
    return
  }
  func.func @transform_0(%arg0: i32) -> (i32, i32) {
    %c0_i32 = arith.constant 0 : i32
    %c0_i32_0 = arith.constant 0 : i32
    return %arg0, %c0_i32 : i32, i32
  }
  func.func @transform_1(%arg0: i32) -> (i32, i32) {
    %c0_i32 = arith.constant 0 : i32
    %c0_i32_0 = arith.constant 0 : i32
    %c0_i32_1 = arith.constant 0 : i32
    return %c0_i32, %c0_i32_0 : i32, i32
  }
  func.func @transform_2(%arg0: i32) -> (i32, i32) {
    %c0_i32 = arith.constant 0 : i32
    %c0_i32_0 = arith.constant 0 : i32
    %c0_i32_1 = arith.constant 0 : i32
    return %c0_i32, %c0_i32_0 : i32, i32
  }
  func.func @transform_3(%arg0: i32) -> (i32, i32) {
    %c0_i32 = arith.constant 0 : i32
    %c0_i32_0 = arith.constant 0 : i32
    return %arg0, %c0_i32 : i32, i32
  }
}

</mosaic_0001>

<bundles_post_ra>
// kernel: tpu_custom_call.1
= control target key start
LH: loop header
LB: loop body
LE: loop exit
PB: predicated region body
PF: predicated region fallthrough
CT: control target
= control target key end

     0   :  { %8 = vsyncpa [#allocation3], 0  ;;  %s335_s0 = inlined_call_operand.hbm [shape: bf16[8,32], index: 0, kind: input, shape index: {}]   ;;  %s336_s1 = inlined_call_operand.hbm [shape: bf16[32,128], index: 1, kind: input, shape index: {}]   ;;  %s337_s2 = inlined_call_operand.vmem [shape: f32[1,128], index: 2, kind: input, shape index: {}]   ;;  %s338_s3 = inlined_call_operand.hbm [shape: f32[8,128], index: 3, kind: output, shape index: {}]  }
   0x1   :  { %9 = vsyncpa [#allocation6], 0 }
   0x2   :  { %10 = vsyncpa [#allocation4], 0  ;;  %s251_s12 = smov [#allocation2]   ;;  %s252_s14 = smov [#allocation5]  }
   0x3   :  { %s17_s13 = sshll.u32 %s251_s12, 4  ;;  %s26_s15 = sshll.u32 %s252_s14, 4  ;;  %s18_s13 = int_to_ptr.vmem [resolvable:$true] %s17_s13  ;;  %s278_s15 = int_to_ptr.vmem [resolvable:$true] %s26_s15 }
   0x4   :  { %s179_s18 = scalar_lea.hbm %s335_s0, 64 }
   0x5   :  { %p180_p0 = scmp.ne.s32.totalorder %s335_s0, %s179_s18  ;;  %p183_p1 = scmp.lt.u32.totalorder %s179_s18, %s335_s0 }
   0x7   :  { %p185_p2 = pnand %p183_p1, %p180_p0 }
   0x9   :  { %188 = shalt.err (!%p185_p2)
}
   0xa   :  { %s189_s23 = scalar_lea.vmem %s18_s13, 64  ;;  %p194_p4 = scmp.lt.s32.totalorder %s18_s13, %s18_s13 }
   0xb   :  { %p190_p3 = scmp.ne.s32.totalorder %s18_s13, %s189_s23  ;;  %p195_p5 = scmp.lt.s32.totalorder %s189_s23, %s189_s23 }
   0xd   :  { %p196_p6 = por %p195_p5, %p194_p4 }
   0xf   :  { %p197_p7 = pnand %p196_p6, %p190_p3 }
  0x11   :  { %200 = shalt.err (!%p197_p7)
}
  0x12   :  { %20 = dma.hbm_to_vmem [thread:$0]  %s335_s0, 64, %s18_s13, [#allocation3]  }
  0x13   :  { %s201_s28 = scalar_lea.hbm %s336_s1, 256 }
  0x14   :  { %p202_p8 = scmp.ne.s32.totalorder %s336_s1, %s201_s28  ;;  %p205_p9 = scmp.lt.u32.totalorder %s201_s28, %s336_s1 }
  0x16   :  { %p207_p10 = pnand %p205_p9, %p202_p8 }
  0x18   :  { %210 = shalt.err (!%p207_p10)
}
  0x19   :  { %s211_s6 = scalar_lea.vmem %s278_s15, 256  ;;  %p216_p12 = scmp.lt.s32.totalorder %s278_s15, %s278_s15 }
  0x1a   :  { %p212_p11 = scmp.ne.s32.totalorder %s278_s15, %s211_s6  ;;  %p217_p13 = scmp.lt.s32.totalorder %s211_s6, %s211_s6 }
  0x1c   :  { %p218_p0 = por %p217_p13, %p216_p12 }
  0x1e   :  { %p219_p1 = pnand %p218_p0, %p212_p11 }
  0x20   :  { %222 = shalt.err (!%p219_p1)
}
  0x21   :  { %s253_s0 = smov 64   ;;  %s254_s7 = smov 4  }
  0x22   :  { %32 = dma.hbm_to_vmem [thread:$0]  %s336_s1, 256, %s278_s15, [#allocation6], %s253_s0, %s253_s0, %s254_s7  }
  0x23   :  { %245 = dma.done.wait [#allocation3], 64  }
  0x24   :  { %246 = vsyncadd [#allocation3], 4294967232 }
  0x25   :  { %247 = dma.done.wait [#allocation6], 256  }
  0x26   :  { %248 = vsyncadd [#allocation6], 4294967040  ;;  %v255_v0 = vmov 0.0   ;;  %vm256_vm0 = vmmov 0   ;;  %v171_v1 = vld [vmem:[#allocation5] sm:$0xff]   ;;  %v172_v2 = vld [vmem:[#allocation5 + $0x8] sm:$0xff]   ;;  %v110_v4 = vlaneseq }
  0x27   :  { %156 = vmatprep.subr.bf16.mxu0 %v255_v0  ;;  %160 = vmatprep.mubr.msk.bf16.mxu0 %vm256_vm0, %v255_v0  ;;  %v42_v3 = vld [vmem:[#allocation2] sm:$0xf]  ;;  %vm66_vm1 = vcmask 261120  }
  0x28   :  { %157 = vmatpush3.bf16.msra.mxu0 %v171_v1  ;;  %v111_v5 = vand.u32 127, %v110_v4  ;;  %v149_v6 = vld [vmem:[%s337_s2] ss:$0 sm:$0xff]  ;;  %s257_s2 = smov [#allocation7]  }
  0x29   :  { %158 = vmatprep.subr.bf16.mxu0 %v255_v0  ;;  %s139_s11 = sshll.u32 %s257_s2, 4  ;;  %s140_s11 = int_to_ptr.vmem [resolvable:$true] %s139_s11 }
  0x2a   :  { %vm113_vm2 = vcmp.ge.s32.totalorder %v111_v5, 36  ;;  %vm114_vm3 = vcmp.lt.s32.totalorder %v111_v5, 68  ;;  %vm112_vm5 = vcmp.lt.s32.totalorder %v111_v5, 4  ;;  %s223_s12 = scalar_lea.vmem %s140_s11, 128  ;;  %p228_p3 = scmp.lt.s32.totalorder %s140_s11, %s140_s11 }
  0x2b   :  { %vm312_vm4 = vmand %vm113_vm2, %vm114_vm3  ;;  %p224_p2 = scmp.ne.s32.totalorder %s140_s11, %s223_s12  ;;  %p229_p4 = scmp.lt.s32.totalorder %s223_s12, %s223_s12 }
  0x2c   :  { %159 = vmatpush3.bf16.msra.mxu0 %v172_v2 }
  0x2d   :  { %p230_p5 = por %p229_p4, %p228_p3 }
  0x2f   :  { %161 = vmatmul.mubr.msk.bf16.vlgmr.msra.gmra.mrb[0].mxu0 %vm66_vm1, %v42_v3  ;;  %p231_p6 = pnand %p230_p5, %p224_p2 }
 0x102   :  { %v104_v7 = vpop.f32.mrb[0].mxu0 }
 0x103   :  { %v105_v9 = vadd.f32 %v149_v6, %v104_v7  ;;  %v162_v10 = vpop.f32.mrb[1].mxu0 }
 0x104   :  { %v107_v11 = vpop.f32.mrb[2].mxu0 }
 0x105   :  { %v127_v12 = vsel %vm312_vm4, %v105_v9, 0.0  ;;  %v163_v13 = vpop.f32.mrb[3].mxu0  ;;  %v116_v14 = vsel %vm112_vm5, %v105_v9, -inf }
 0x106   :  { %v128_v15 = vmul.f32 1.442695, %v127_v12  ;;  %117 = vmax.xlane.f32.xlu0 %v116_v14 }
 0x108   :  { %173 = vpow2.f32 %v128_v15 }
 0x112   :  { %v174_v16 = vpop.eup %173 }
 0x113   :  { %v130_v17 = vsel %vm312_vm4, %v174_v16, %v105_v9 }
 0x193   :  { %v118_v18 = vpop.xlane.xlu0 %117 }
 0x194   :  { %v119_v19 = vsub.f32 %v116_v14, %v118_v18 }
 0x196   :  { %v120_v20 = vmul.f32 1.442695, %v119_v19 }
 0x198   :  { %175 = vpow2.f32 %v120_v20 }
 0x1a2   :  { %v176_v21 = vpop.eup %175 }
 0x1a3   :  { %v122_v22 = vsel %vm112_vm5, %v176_v21, 0.0 }
 0x1a4   :  { %123 = vadd.xlane.f32.xlu0 %v122_v22 }
 0x231   :  { %v124_v23 = vpop.xlane.xlu0 %123 }
 0x232   :  { %177 = vrcp.f32 %v124_v23 }
 0x23c   :  { %v178_v24 = vpop.eup %177 }
 0x23d   :  { %v126_v25 = vmul.f32 %v178_v24, %v122_v22 }
 0x23f   :  { %v131_v26 = vsel %vm112_vm5, %v126_v25, %v130_v17 }
 0x240   :  { %132 = vst [vmem:[#allocation7] sm:$0xff] %v131_v26 }
 0x241   :  { %234 = shalt.err (!%p231_p6)
}
 0x242   :  { %s235_s15 = scalar_lea.hbm %s338_s3, 128 }
 0x243   :  { %p236_p7 = scmp.ne.s32.totalorder %s338_s3, %s235_s15  ;;  %p239_p8 = scmp.lt.u32.totalorder %s235_s15, %s338_s3 }
 0x245   :  { %p241_p9 = pnand %p239_p8, %p236_p7 }
 0x247   :  { %244 = shalt.err (!%p241_p9)
}
 0x248   :  { %142 = dma.vmem_to_hbm [thread:$0]  %s140_s11, 128, %s338_s3, [#allocation4]  }
 0x249   :  { %249 = dma.done.wait [#allocation4], 128  }
 0x24a   :  { %250 = vsyncadd [#allocation4], 4294967168 }
 0x24b   :  { %146 = vsyncpa [#allocation3], 1 }
 0x24c   :  { %147 = vsyncpa [#allocation6], 1 }
 0x24d   :  { %148 = vsyncpa [#allocation4], 1 }

</bundles_post_ra>
